<compile_context>
chip_gen: v6e
topology: v6e:2x2x1
jax: 0.10.0
libtpu: 0.0.40
codegen_flags: <defaults>
</compile_context>

<pallas_src>
import functools

import jax
import jax.numpy as jnp
from jax.experimental import pallas as pl
from jax.experimental.pallas import tpu as pltpu


def _round_up(v: int, m: int) -> int:
    return ((v + m - 1) // m) * m


def _tpu_defaults():
    """(target_tile_bytes, vmem_limit_bytes) per TPU generation."""
    kind = ""
    try:
        kind = jax.devices()[0].device_kind.lower()
    except Exception:
        pass
    if "v7" in kind or "7x" in kind:
        # v7x: ~3.2 TB/s HBM but only 64 MiB physical VMEM.
        return 14 << 20, 48 << 20
    if "v6" in kind:
        # v6e: ~1.3-1.4 TB/s HBM, 128 MiB VMEM (default scoped limit is 32 MiB).
        return 10 << 20, 40 << 20
    if "v5e" in kind or "v5 lite" in kind or "v5lite" in kind:
        # v5e: 16 MiB default scoped VMEM; keep tiles modest.
        return 5 << 20, 24 << 20
    # Unknown generation: conservative sizes, default scoped VMEM limit.
    return 4 << 20, None


def _model_compiler_kernel(h, p, x_ref, w_ref, b_ref, d_ref, y_ref, loss_ref):
    # x: (TILE_B, N) VMEM   w: (1, N) VMEM   b: (1, 1) SMEM   d: (1, TILE_B) VMEM
    # Contract over N with the batch on the lane axis of the result:
    #   (1, N) . (TILE_B, N)^T -> (1, TILE_B)   (MXU, lane-dense output slab)
    # Default precision (per perf review): compute stays hidden under the x DMA.
    y_hat = jax.lax.dot_general(
        w_ref[...],
        x_ref[...],
        dimension_numbers=(((1,), (1,)), ((), ())),
        preferred_element_type=jnp.float32,
    )
    y_hat = y_hat + b_ref[0, 0]

    d = d_ref[...]
    # perishable=True -> y == y_hat, so loss == cost: compute + store once.
    nv_cost = h * jnp.maximum(y_hat - d, 0.0) + p * jnp.maximum(d - y_hat, 0.0)

    y_ref[...] = y_hat.astype(y_ref.dtype)
    loss_ref[...] = nv_cost.astype(loss_ref.dtype)


def _choose_tiling(batch: int, n_features: int, target_tile_bytes: int):
    """Pick (tile_b, num_tiles). Byte-governed, VMEM-(lane-pad)-aware, >=2 tiles
    for megacore whenever the batch is large enough."""
    if batch < 256:
        # Single block whose shape equals the full array dims (always legal),
        # no padding, no ragged edge.
        return batch, 1
    # Per-row VMEM footprint: the lane axis (N) is padded to a multiple of 128.
    padded_row_bytes = 4 * _round_up(max(n_features, 1), 128)
    n_tiles = max(2, pl.cdiv(batch * padded_row_bytes, target_tile_bytes))
    tile_b = _round_up(pl.cdiv(batch, n_tiles), 128)
    tile_b = max(128, min(tile_b, 32768))
    return tile_b, pl.cdiv(batch, tile_b)


def model_compiler_forward(x, demand, weight, bias, *, h=1.0, p=1.0):
    """Pallas forward of ModelCompiler(nn.Linear(N, 1), perishable=True).

    Args:
      x:      (B, N) float32 features.
      demand: (B, 1) float32 demand.
      weight: (1, N) float32 (torch nn.Linear weight layout).
      bias:   (1,)   float32.
      h, p:   holding / penalty cost coefficients of the newsvendor loss.

    Returns:
      (y, loss, cost), each (B, 1) float32.  In the perishable path
      cost == loss, so the same array is returned for both.
    """
    B, N = x.shape
    target_tile_bytes, vmem_limit = _tpu_defaults()
    tile_b, num_tiles = _choose_tiling(B, N, target_tile_bytes)

    x_p = x.astype(jnp.float32)                      # no padding copy of x
    d_row = demand.astype(jnp.float32).reshape(1, B)  # lane-dense demand slab
    w_row = weight.astype(jnp.float32).reshape(1, N)
    b_scalar = bias.astype(jnp.float32).reshape(1, 1)

    x_spec = pl.BlockSpec((tile_b, N), lambda i: (i, 0))   # pipelined x stream
    w_spec = pl.BlockSpec((1, N), lambda i: (0, 0))         # resident weight row
    b_spec = pl.BlockSpec(memory_space=pltpu.MemorySpace.SMEM)
    lane_spec = pl.BlockSpec((1, tile_b), lambda i: (0, i))  # lane-dense slabs

    kernel = functools.partial(_model_compiler_kernel, float(h), float(p))

    y_row, loss_row = pl.pallas_call(
        kernel,
        out_shape=(
            jax.ShapeDtypeStruct((1, B), jnp.float32),
            jax.ShapeDtypeStruct((1, B), jnp.float32),
        ),
        grid=(num_tiles,),
        in_specs=[x_spec, w_spec, b_spec, lane_spec],
        out_specs=(lane_spec, lane_spec),
        compiler_params=pltpu.CompilerParams(
            dimension_semantics=("parallel",),
            vmem_limit_bytes=vmem_limit,
        ),
        cost_estimate=pl.CostEstimate(
            flops=2 * B * N,
            transcendentals=0,
            bytes_accessed=4 * (B * N + 3 * B + N + 1),
        ),
    )(x_p, w_row, b_scalar, d_row)

    y = y_row.reshape(B, 1)
    loss = loss_row.reshape(B, 1)
    cost = loss  # perishable: identical values; avoids a 3rd HBM writeback
    return y, loss, cost


if __name__ == "__main__":
    key = jax.random.PRNGKey(0)
    kx, kd, kw, kb = jax.random.split(key, 4)

    # Small demo shapes (module forward is (1, N) per step; batch it to 128 rows).
    B, N = 128, 32
    x = jax.random.normal(kx, (B, N), dtype=jnp.float32)
    demand = jax.random.uniform(kd, (B, 1), dtype=jnp.float32) * 2.0

    # Deterministic "nn.Linear(N, 1)" params (torch layout: weight (1, N), bias (1,)).
    weight = jax.random.normal(kw, (1, N), dtype=jnp.float32) / jnp.sqrt(N)
    bias = jax.random.normal(kb, (1,), dtype=jnp.float32) * 0.1

    y, loss, cost = model_compiler_forward(x, demand, weight, bias, h=1.0, p=1.0)
    y, loss, cost = jax.block_until_ready((y, loss, cost))

    # High-precision reference (perishable path: loss == cost).
    y_ref = jnp.dot(x, weight.T, precision=jax.lax.Precision.HIGHEST) + bias
    loss_ref = jnp.maximum(y_ref - demand, 0.0) + jnp.maximum(demand - y_ref, 0.0)

    # The kernel's matmul runs at default MXU precision (f32 operands rounded to
    # bf16 per the perf review).  Worst-case error per product is ~2^-6 relative,
    # so bound the output error elementwise instead of using a fixed atol.
    err_bound = jnp.dot(jnp.abs(x), jnp.abs(weight.T)) * (2.0 ** -6) + 1e-3

    assert y.shape == (B, 1) and loss.shape == (B, 1) and cost.shape == (B, 1)
    assert bool(jnp.all(jnp.abs(y - y_ref) <= err_bound))
    # |newsvendor(y, d) - newsvendor(y_ref, d)| <= max(h, p) * |y - y_ref|
    assert bool(jnp.all(jnp.abs(loss - loss_ref) <= err_bound))
    assert bool(jnp.all(jnp.abs(cost - loss_ref) <= err_bound))

    print("KERNEL_OK")
</pallas_src>

<mosaic_0001>
module attributes {stable_mosaic.version = 11 : i64} {
  func.func @_model_compiler_kernel(%arg0: i32, %arg1: memref<128x32xf32, #tpu.memory_space<vmem>>, %arg2: memref<1x32xf32, #tpu.memory_space<vmem>>, %arg3: memref<1x1xf32, #tpu.memory_space<smem>>, %arg4: memref<1x128xf32, #tpu.memory_space<vmem>>, %arg5: memref<1x128xf32, #tpu.memory_space<vmem>>, %arg6: memref<1x128xf32, #tpu.memory_space<vmem>>) attributes {dimension_semantics = [#tpu.dimension_semantics<parallel>], iteration_bounds = array<i64: 1>, scalar_prefetch = 0 : i64, scratch_operands = 0 : i64, tpu.core_type = #tpu.core_type<tc>, window_params = [{transform_indices = @transform_0, window_bounds = array<i64: 128, 32>}, {pipeline_mode = #tpu.pipeline_mode<synchronous>, transform_indices = @transform_1, window_bounds = array<i64: 1, 32>}, {transform_indices = @transform_2, window_bounds = array<i64: 1, 1>}, {transform_indices = @transform_3, window_bounds = array<i64: 1, 128>}, {transform_indices = @transform_4, window_bounds = array<i64: 1, 128>}, {transform_indices = @transform_5, window_bounds = array<i64: 1, 128>}]} {
    %c0 = arith.constant 0 : index
    %c0_0 = arith.constant 0 : index
    %0 = vector.load %arg2[%c0, %c0_0] : memref<1x32xf32, #tpu.memory_space<vmem>>, vector<1x32xf32>
    %c0_1 = arith.constant 0 : index
    %c0_2 = arith.constant 0 : index
    %1 = vector.load %arg1[%c0_1, %c0_2] : memref<128x32xf32, #tpu.memory_space<vmem>>, vector<128x32xf32>
    %cst = arith.constant dense<0.000000e+00> : vector<1x128xf32>
    %2 = tpu.matmul %0, %1, %cst {dimension_numbers = #tpu.dot_dimension_numbers<[1], [1], [0], [0], [0, 0, 1, 0], [], []>} : vector<1x32xf32>, vector<128x32xf32>, vector<1x128xf32> -> vector<1x128xf32>
    %c0_3 = arith.constant 0 : index
    %c0_4 = arith.constant 0 : index
    %3 = memref.load %arg3[%c0_3, %c0_4] : memref<1x1xf32, #tpu.memory_space<smem>>
    %4 = vector.broadcast %3 : f32 to vector<1x128xf32>
    %5 = arith.addf %2, %4 : vector<1x128xf32>
    %c0_5 = arith.constant 0 : index
    %c0_6 = arith.constant 0 : index
    %6 = vector.load %arg4[%c0_5, %c0_6] : memref<1x128xf32, #tpu.memory_space<vmem>>, vector<1x128xf32>
    %7 = arith.subf %5, %6 : vector<1x128xf32>
    %cst_7 = arith.constant 0.000000e+00 : f32
    %8 = vector.broadcast %cst_7 : f32 to vector<1x128xf32>
    %9 = arith.maximumf %7, %8 : vector<1x128xf32>
    %cst_8 = arith.constant 1.000000e+00 : f32
    %10 = vector.broadcast %cst_8 : f32 to vector<1x128xf32>
    %11 = arith.mulf %10, %9 : vector<1x128xf32>
    %12 = arith.subf %6, %5 : vector<1x128xf32>
    %cst_9 = arith.constant 0.000000e+00 : f32
    %13 = vector.broadcast %cst_9 : f32 to vector<1x128xf32>
    %14 = arith.maximumf %12, %13 : vector<1x128xf32>
    %cst_10 = arith.constant 1.000000e+00 : f32
    %15 = vector.broadcast %cst_10 : f32 to vector<1x128xf32>
    %16 = arith.mulf %15, %14 : vector<1x128xf32>
    %17 = arith.addf %11, %16 : vector<1x128xf32>
    %c0_11 = arith.constant 0 : index
    %c0_12 = arith.constant 0 : index
    %18 = vector.load %arg5[%c0_11, %c0_12] : memref<1x128xf32, #tpu.memory_space<vmem>>, vector<1x128xf32>
    tpu.vector_store %arg5[%c0_11, %c0_12], %5 {strides = array<i32>} : memref<1x128xf32, #tpu.memory_space<vmem>>, vector<1x128xf32>,
    %c0_13 = arith.constant 0 : index
    %c0_14 = arith.constant 0 : index
    %19 = vector.load %arg6[%c0_13, %c0_14] : memref<1x128xf32, #tpu.memory_space<vmem>>, vector<1x128xf32>
    tpu.vector_store %arg6[%c0_13, %c0_14], %17 {strides = array<i32>} : memref<1x128xf32, #tpu.memory_space<vmem>>, vector<1x128xf32>,
    return
  }
  func.func @transform_0(%arg0: i32) -> (i32, i32) {
    %c0_i32 = arith.constant 0 : i32
    %c0_i32_0 = arith.constant 0 : i32
    return %arg0, %c0_i32 : i32, i32
  }
  func.func @transform_1(%arg0: i32) -> (i32, i32) {
    %c0_i32 = arith.constant 0 : i32
    %c0_i32_0 = arith.constant 0 : i32
    %c0_i32_1 = arith.constant 0 : i32
    return %c0_i32, %c0_i32_0 : i32, i32
  }
  func.func @transform_2(%arg0: i32) -> (i32, i32) {
    %c0_i32 = arith.constant 0 : i32
    %c0_i32_0 = arith.constant 0 : i32
    %c0_i32_1 = arith.constant 0 : i32
    return %c0_i32, %c0_i32_0 : i32, i32
  }
  func.func @transform_3(%arg0: i32) -> (i32, i32) {
    %c0_i32 = arith.constant 0 : i32
    %c0_i32_0 = arith.constant 0 : i32
    return %c0_i32, %arg0 : i32, i32
  }
  func.func @transform_4(%arg0: i32) -> (i32, i32) {
    %c0_i32 = arith.constant 0 : i32
    %c0_i32_0 = arith.constant 0 : i32
    return %c0_i32, %arg0 : i32, i32
  }
  func.func @transform_5(%arg0: i32) -> (i32, i32) {
    %c0_i32 = arith.constant 0 : i32
    %c0_i32_0 = arith.constant 0 : i32
    return %c0_i32, %arg0 : i32, i32
  }
}

</mosaic_0001>

<bundles_post_ra>
// kernel: tpu_custom_call.1
= control target key start
LH: loop header
LB: loop body
LE: loop exit
PB: predicated region body
PF: predicated region fallthrough
CT: control target
= control target key end

     0   :  { %12 = vsyncpa [#allocation4], 0  ;;  %vm41_vm0 = vcmask 261120   ;;  %v316_v1 = vmov 0.0   ;;  %vm317_vm1 = vmmov 0   ;;  %s430_s0 = inlined_call_operand.vmem [shape: f32[128,32], index: 0, kind: input, shape index: {}]   ;;  %s431_s1 = inlined_call_operand.vmem [shape: f32[1,32], index: 1, kind: input, shape index: {}]   ;;  %s432_s2 = inlined_call_operand.<no memory space> [shape: f32[1,1], index: 2, kind: input, shape index: {}]   ;;  %s433_s3 = inlined_call_operand.vmem [shape: f32[1,128], index: 3, kind: input, shape index: {}]   ;;  %s434_s4 = inlined_call_operand.hbm [shape: f32[1,128], index: 4, kind: output, shape index: {0}]   ;;  %s435_s5 = inlined_call_operand.hbm [shape: f32[1,128], index: 5, kind: output, shape index: {1}]  }
   0x1   :  { %v38_v0 = vld [vmem:[%s430_s0 + $0x78] sm:$0xff]  ;;  %233 = vmatprep.subr.mxu0 %v316_v1  ;;  %265 = vmatprep.mubr.msk.f32.mxu0 %vm317_vm1, %v316_v1  ;;  %v37_v2 = vld [vmem:[%s430_s0 + $0x70] sm:$0xff] }
   0x2   :  { %234 = vmatpush3.xpose.msk.msra.mxu0 %vm41_vm0, %v38_v0 }
   0x3   :  { %235 = vmatprep.subr.mxu0 %v316_v1 }
   0x4   :  { %13 = vsyncpa [#allocation6], 0  ;;  %v36_v3 = vld [vmem:[%s430_s0 + $0x68] sm:$0xff]  ;;  %v35_v4 = vld [vmem:[%s430_s0 + $0x60] sm:$0xff]  ;;  %v40_v18 = vstv %s432_s2  ;;  %s318_s29 = smov [#allocation3]  }
   0x5   :  { %v34_v5 = vld [vmem:[%s430_s0 + $0x58] sm:$0xff]  ;;  %v33_v6 = vld [vmem:[%s430_s0 + $0x50] sm:$0xff]  ;;  %v32_v7 = vld [vmem:[%s430_s0 + $0x48] sm:$0xff]  ;;  %s177_s30 = sshll.u32 %s318_s29, 4  ;;  %s178_s30 = int_to_ptr.vmem [resolvable:$true] %s177_s30 }
   0x6   :  { %236 = vmatpush3.xpose.msk.msra.mxu0 %vm41_vm0, %v37_v2  ;;  %v31_v8 = vld [vmem:[%s430_s0 + $0x40] sm:$0xff]  ;;  %v30_v9 = vld [vmem:[%s430_s0 + $0x38] sm:$0xff]  ;;  %v29_v10 = vld [vmem:[%s430_s0 + $0x30] sm:$0xff]  ;;  %s272_s8 = scalar_lea.vmem %s178_s30, 16  ;;  %s276_s9 = scalar_lea.vmem %s178_s30, 32 }
   0x7   :  { %237 = vmatprep.subr.mxu0 %v316_v1  ;;  %v28_v11 = vld [vmem:[%s430_s0 + $0x28] sm:$0xff]  ;;  %v27_v12 = vld [vmem:[%s430_s0 + $0x20] sm:$0xff]  ;;  %v26_v13 = vld [vmem:[%s430_s0 + $0x18] sm:$0xff]  ;;  %p273_p0 = scmp.ne.s32.totalorder %s178_s30, %s272_s8  ;;  %p277_p1 = scmp.lt.s32.totalorder %s178_s30, %s178_s30 }
   0x8   :  { %v25_v14 = vld [vmem:[%s430_s0 + $0x10] sm:$0xff]  ;;  %v24_v15 = vld [vmem:[%s430_s0 + $0x8] sm:$0xff]  ;;  %v23_v16 = vld [vmem:[%s430_s0] sm:$0xff]  ;;  %s319_s0 = smov [#allocation5]   ;;  %p278_p2 = scmp.lt.s32.totalorder %s276_s9, %s272_s8 }
   0x9   :  { %v22_v17 = vld [vmem:[%s431_s1] sm:$0x1]  ;;  %s187_s1 = sshll.u32 %s319_s0, 4  ;;  %s188_s1 = int_to_ptr.vmem [resolvable:$true] %s187_s1 }
   0xa   :  { %238 = vmatpush3.xpose.msk.msra.mxu0 %vm41_vm0, %v36_v3  ;;  %v163_v20 = vld [vmem:[%s433_s3] sm:$0x1]  ;;  %p279_p3 = por %p278_p2, %p277_p1 }
   0xb   :  { %239 = vmatprep.subr.mxu0 %v316_v1 }
   0xc   :  { %p280_p4 = pnand %p279_p3, %p273_p0 }
   0xe   :  { %240 = vmatpush3.xpose.msk.msra.mxu0 %vm41_vm0, %v35_v4 }
   0xf   :  { %241 = vmatprep.subr.mxu0 %v316_v1 }
  0x12   :  { %242 = vmatpush3.xpose.msk.msra.mxu0 %vm41_vm0, %v34_v5 }
  0x13   :  { %243 = vmatprep.subr.mxu0 %v316_v1 }
  0x16   :  { %244 = vmatpush3.xpose.msk.msra.mxu0 %vm41_vm0, %v33_v6 }
  0x17   :  { %245 = vmatprep.subr.mxu0 %v316_v1 }
  0x1a   :  { %246 = vmatpush3.xpose.msk.msra.mxu0 %vm41_vm0, %v32_v7 }
  0x1b   :  { %247 = vmatprep.subr.mxu0 %v316_v1 }
  0x1e   :  { %248 = vmatpush3.xpose.msk.msra.mxu0 %vm41_vm0, %v31_v8 }
  0x1f   :  { %249 = vmatprep.subr.mxu0 %v316_v1 }
  0x22   :  { %250 = vmatpush3.xpose.msk.msra.mxu0 %vm41_vm0, %v30_v9 }
  0x23   :  { %251 = vmatprep.subr.mxu0 %v316_v1 }
  0x26   :  { %252 = vmatpush3.xpose.msk.msra.mxu0 %vm41_vm0, %v29_v10 }
  0x27   :  { %253 = vmatprep.subr.mxu0 %v316_v1 }
  0x2a   :  { %254 = vmatpush3.xpose.msk.msra.mxu0 %vm41_vm0, %v28_v11 }
  0x2b   :  { %255 = vmatprep.subr.mxu0 %v316_v1 }
  0x2e   :  { %256 = vmatpush3.xpose.msk.msra.mxu0 %vm41_vm0, %v27_v12 }
  0x2f   :  { %257 = vmatprep.subr.mxu0 %v316_v1 }
  0x32   :  { %258 = vmatpush3.xpose.msk.msra.mxu0 %vm41_vm0, %v26_v13 }
  0x33   :  { %259 = vmatprep.subr.mxu0 %v316_v1 }
  0x36   :  { %260 = vmatpush3.xpose.msk.msra.mxu0 %vm41_vm0, %v25_v14 }
  0x37   :  { %261 = vmatprep.subr.mxu0 %v316_v1 }
  0x3a   :  { %262 = vmatpush3.xpose.msk.msra.mxu0 %vm41_vm0, %v24_v15 }
  0x3b   :  { %263 = vmatprep.subr.mxu0 %v316_v1 }
  0x3e   :  { %264 = vmatpush3.xpose.msk.msra.mxu0 %vm41_vm0, %v23_v16 }
  0x41   :  { %266 = vmatmul.mubr.msk.f32.vlgmr.msra.gmra.mxu0 %vm41_vm0, %v22_v17 }
 0x101   :  { %v159_v19 = vpop.f32.mrf.mxu0 }
 0x102   :  { %v160_v21 = vadd.f32 %v159_v19, %v40_v18 }
 0x103   :  { %v267_v22 = vpop.f32.mrf.mxu0 }
 0x104   :  { %169 = vst [vmem:[#allocation3] sm:$0x1] %v160_v21  ;;  %v164_v23 = vsub.f32 %v160_v21, %v163_v20  ;;  %v166_v24 = vsub.f32 %v163_v20, %v160_v21 }
 0x105   :  { %283 = shalt.err (!%p280_p4)
}
 0x106   :  { %180 = dma.vmem_to_hbm [thread:$0]  %s178_s30, 16, %s434_s4, [#allocation4]   ;;  %v165_v25 = vmax.f32 %v164_v23, 0.0  ;;  %v167_v26 = vmax.f32 %v166_v24, 0.0 }
 0x107   :  { %s292_s3 = scalar_lea.vmem %s188_s1, 16  ;;  %s296_s11 = scalar_lea.vmem %s188_s1, 32 }
 0x108   :  { %v168_v27 = vadd.f32 %v167_v26, %v165_v25  ;;  %p293_p5 = scmp.ne.s32.totalorder %s188_s1, %s292_s3  ;;  %p297_p6 = scmp.lt.s32.totalorder %s188_s1, %s188_s1 }
 0x109   :  { %p298_p7 = scmp.lt.s32.totalorder %s296_s11, %s292_s3 }
 0x10a   :  { %170 = vst [vmem:[#allocation5] sm:$0x1] %v168_v27 }
 0x10b   :  { %p299_p8 = por %p298_p7, %p297_p6 }
 0x10d   :  { %p300_p9 = pnand %p299_p8, %p293_p5 }
 0x10f   :  { %303 = shalt.err (!%p300_p9)
}
 0x110   :  { %190 = dma.vmem_to_hbm [thread:$0]  %s188_s1, 16, %s435_s5, [#allocation6]  }
 0x111   :  { %312 = dma.done.wait [#allocation4], 16  }
 0x112   :  { %313 = vsyncadd [#allocation4], 4294967280 }
 0x113   :  { %314 = dma.done.wait [#allocation6], 16  }
 0x114   :  { %315 = vsyncadd [#allocation6], 4294967280 }
 0x115   :  { %197 = vsyncpa [#allocation4], 1 }
 0x116   :  { %198 = vsyncpa [#allocation6], 1 }

</bundles_post_ra>
